<compile_context>
chip_gen: v7x
topology: tpu7x:2x2x1
jax: 0.10.0
libtpu: 0.0.40
codegen_flags: <defaults>
</compile_context>

<pallas_src>
import functools

import jax
import jax.numpy as jnp
from jax import lax
from jax.experimental import pallas as pl
from jax.experimental.pallas import tpu as pltpu

_LANE = 128
_SENTINEL = 0x7FFF     # "no supervised label" marker (>= any padded label lane index)
_NEG_BIG = -1e30       # bias for padded label lanes: exp underflows to exactly 0.0


def _round_up(x, m):
    return (x + m - 1) // m * m


def _coregulated_kernel(tok_ref, x_ref, w_ref, b_ref, probs_ref, part_ref, *,
                        n_models, num_labels, lanes_per_model,
                        main_model_idx, warmup):
    Lp = lanes_per_model
    x = x_ref[...]                                              # (TN, H) bf16
    # One fused MXU matmul for all M classifier heads (lane-packed), f32 accumulate.
    logits_all = jnp.dot(x, w_ref[...],
                         preferred_element_type=jnp.float32) + b_ref[...]   # (TN, M*Lp)

    packed = tok_ref[...]                                       # (TN, 1) int32
    label = packed & 0xFFFF                                     # label id or sentinel
    kmask = (packed >> 16).astype(jnp.float32)                  # (TN, 1) kld-loss mask

    tn = x.shape[0]
    lane = lax.broadcasted_iota(jnp.int32, (tn, Lp), 1)
    onehot = (label == lane).astype(jnp.float32)                # zero rows when unlabeled
    valid = lane < num_labels                                   # mask padded label lanes

    ce_sum = jnp.float32(0.0)
    sum_probs = jnp.zeros((tn, Lp), jnp.float32)
    sum_logp = jnp.zeros((tn, Lp), jnp.float32)
    probs_main = None
    for m in range(n_models):                                   # static unroll over models
        lg = logits_all[:, m * Lp:(m + 1) * Lp]                 # lane-aligned static slice
        mx = jnp.max(lg, axis=-1, keepdims=True)
        e = jnp.exp(lg - mx)
        s = jnp.sum(e, axis=-1, keepdims=True)
        probs = e / s
        logp = lg - mx - jnp.log(s)                             # reused for CE and KL
        ce_sum = ce_sum - jnp.sum(onehot * logp)                # label_mask folded via sentinel
        if m == main_model_idx:
            probs_main = probs
        if not warmup:
            sum_probs = sum_probs + probs
            sum_logp = sum_logp + logp

    if warmup:
        kl_sum = jnp.float32(0.0)
    else:
        # sum_m avg*(log(avg) - logp_m)  ==  avg*(M*log(avg) - sum_m logp_m)
        avg = sum_probs * jnp.float32(1.0 / n_models)
        pointwise = avg * (jnp.float32(n_models) * jnp.log(avg) - sum_logp)
        pointwise = jnp.where(valid, pointwise, 0.0)            # guard 0*log(0) on pad lanes
        kl_sum = jnp.sum(pointwise * kmask)

    probs_ref[...] = probs_main                                 # lane-dense (TN, 128) store

    # Per-tile raw partial sums in this tile's own (8,128) slot -> token axis stays parallel.
    row = lax.broadcasted_iota(jnp.int32, (8, _LANE), 0)
    col = lax.broadcasted_iota(jnp.int32, (8, _LANE), 1)
    part_ref[...] = jnp.where((row == 0) & (col == 0), ce_sum,
                              jnp.where((row == 0) & (col == 1), kl_sum, 0.0))


def coregulated_forward(x, label_ids, label_mask, gold_entities_mask,
                        weights, biases, *, agreement_strength=5.0,
                        main_model_idx=0, warmup=False, tile_n=512):
    """x: (B,S,H); label_ids/label_mask/gold_entities_mask: (B,S);
    weights: (M,H,L); biases: (M,1,L).  Returns (loss, pred_labels (B,S,L))."""
    B, S, H = x.shape
    M, _, L = weights.shape
    N = B * S
    Lp = _round_up(L, _LANE)                                    # lane-dense label block

    # bf16 sublane-aligned token tile; shrink to the (padded) problem if it is smaller.
    TN = _round_up(min(tile_n, _round_up(N, 16)), 16)
    N_pad = _round_up(N, TN)
    num_tiles = N_pad // TN

    # --- fold per-token labels + label_mask + kld_mask into one int32 word ---
    labels = label_ids.reshape(N).astype(jnp.int32)
    lmask = label_mask.reshape(N)
    kmask = jnp.logical_and(jnp.logical_not(gold_entities_mask.reshape(N)), lmask)
    tok = jnp.where(lmask, labels, _SENTINEL) | (kmask.astype(jnp.int32) << 16)
    tok = jnp.full((N_pad,), _SENTINEL, jnp.int32).at[:N].set(tok).reshape(N_pad, 1)

    # --- activations in bf16 for the MXU (f32 accumulation in-kernel) ---
    x_pad = jnp.zeros((N_pad, H), jnp.bfloat16).at[:N].set(
        x.reshape(N, H).astype(jnp.bfloat16))

    # --- lane-pack the M heads: (M,H,L) -> (H, M*Lp); pad lanes get -1e30 bias ---
    w_pad = jnp.zeros((M, H, Lp), jnp.float32).at[:, :, :L].set(weights.astype(jnp.float32))
    w_packed = jnp.transpose(w_pad, (1, 0, 2)).reshape(H, M * Lp).astype(jnp.bfloat16)
    b_pad = jnp.full((M, 1, Lp), _NEG_BIG, jnp.float32).at[:, :, :L].set(
        biases.astype(jnp.float32))
    b_packed = jnp.transpose(b_pad, (1, 0, 2)).reshape(1, M * Lp)

    kernel = functools.partial(
        _coregulated_kernel, n_models=M, num_labels=L, lanes_per_model=Lp,
        main_model_idx=main_model_idx, warmup=warmup)

    probs_pad, partials = pl.pallas_call(
        kernel,
        out_shape=(jax.ShapeDtypeStruct((N_pad, Lp), jnp.float32),
                   jax.ShapeDtypeStruct((num_tiles * 8, _LANE), jnp.float32)),
        grid=(num_tiles,),
        in_specs=[
            pl.BlockSpec((TN, 1), lambda i: (i, 0)),            # packed token metadata
            pl.BlockSpec((TN, H), lambda i: (i, 0)),            # activations (pipelined)
            pl.BlockSpec((H, M * Lp), lambda i: (0, 0)),        # packed weights (resident)
            pl.BlockSpec((1, M * Lp), lambda i: (0, 0)),        # packed biases (resident)
        ],
        out_specs=(
            pl.BlockSpec((TN, Lp), lambda i: (i, 0)),           # main-model probs (lane-dense)
            pl.BlockSpec((8, _LANE), lambda i: (i, 0)),         # per-tile partial sums
        ),
        compiler_params=pltpu.CompilerParams(
            dimension_semantics=("parallel",),                  # no serial scalar accumulator
            vmem_limit_bytes=48 * 1024 * 1024),                 # under v7x 64 MiB physical
    )(tok, x_pad, w_packed, b_packed)

    # --- scalar epilogue: normalise raw partial sums exactly like the PyTorch module ---
    ce_total = jnp.sum(partials[:, 0])
    kl_total = jnp.sum(partials[:, 1])
    n_lab = jnp.sum(lmask.astype(jnp.float32))
    # TODO(synk): n_lab == 0 or n_sel == 0 divides by zero (NaN) exactly like PyTorch's
    # empty-mask path; no special-casing applied.
    models_loss = ce_total / (M * n_lab)
    if warmup:
        loss = models_loss
    else:
        n_sel = jnp.sum(kmask.astype(jnp.float32))
        agreement_loss = kl_total / (M * n_sel * L)
        loss = models_loss + jnp.float32(agreement_strength) * agreement_loss

    pred_labels = probs_pad[:N, :L].reshape(B, S, L)
    return loss, pred_labels


def _reference_forward(x, label_ids, label_mask, gold_entities_mask,
                       weights, biases, *, agreement_strength=5.0,
                       main_model_idx=0, warmup=False):
    """Pure-JAX reference following the original PyTorch control flow:
    per-model CE losses, prob averaging, masked KLDivLoss(reduction='mean')."""
    B, S, H = x.shape
    M, _, L = weights.shape
    N = B * S
    xb = x.reshape(N, H).astype(jnp.bfloat16)        # same bf16 matmul inputs as the kernel
    lm = label_mask.reshape(N).astype(jnp.float32)
    km = jnp.logical_and(jnp.logical_not(gold_entities_mask), label_mask)
    km = km.reshape(N).astype(jnp.float32)[:, None]
    lbl = label_ids.reshape(N)

    losses, probs_all = [], []
    for m in range(M):
        logits = jnp.dot(xb, weights[m].astype(jnp.bfloat16),
                         preferred_element_type=jnp.float32) + biases[m].astype(jnp.float32)
        mx = jnp.max(logits, axis=-1, keepdims=True)
        e = jnp.exp(logits - mx)
        s = jnp.sum(e, axis=-1, keepdims=True)
        probs = e / s
        logp = logits - mx - jnp.log(s)
        ce = -jnp.take_along_axis(logp, lbl[:, None], axis=-1)[:, 0]
        losses.append(jnp.sum(ce * lm) / jnp.sum(lm))
        probs_all.append(probs)
    models_loss = sum(losses) / M
    if warmup:
        loss = models_loss
    else:
        avg = sum(probs_all) / M
        n_sel = jnp.sum(km)
        agg = 0.0
        for m in range(M):
            pw = avg * (jnp.log(avg) - jnp.log(probs_all[m]))
            agg = agg + jnp.sum(pw * km) / (n_sel * L)
        loss = models_loss + agreement_strength * (agg / M)
    return loss, probs_all[main_model_idx].reshape(B, S, L)


if __name__ == "__main__":
    key = jax.random.PRNGKey(0)
    B, S, H, L, M = 2, 16, 32, 8, 4

    k_x, k_lbl, k_lm, k_gm, k_w, k_b = jax.random.split(key, 6)
    x = jax.random.normal(k_x, (B, S, H), dtype=jnp.float32)
    label_ids = jax.random.randint(k_lbl, (B, S), 0, L)
    label_mask = jax.random.bernoulli(k_lm, 0.9, (B, S))
    gold_entities_mask = jax.random.bernoulli(k_gm, 0.3, (B, S))
    # deterministic synthetic sub-model parameters (M stacked linear classifiers)
    weights = 0.1 * jax.random.normal(k_w, (M, H, L), dtype=jnp.float32)
    biases = 0.01 * jax.random.normal(k_b, (M, 1, L), dtype=jnp.float32)

    # tile_n=16 -> 2-tile grid on this toy size (exercises the pipelined token grid).
    loss, pred_labels = coregulated_forward(
        x, label_ids, label_mask, gold_entities_mask, weights, biases,
        agreement_strength=5.0, main_model_idx=0, warmup=False, tile_n=16)
    jax.block_until_ready((loss, pred_labels))

    ref_loss, ref_pred = _reference_forward(
        x, label_ids, label_mask, gold_entities_mask, weights, biases,
        agreement_strength=5.0, main_model_idx=0, warmup=False)

    assert pred_labels.shape == (B, S, L)
    assert bool(jnp.allclose(loss, ref_loss, atol=1e-4, rtol=1e-4)), (loss, ref_loss)
    assert bool(jnp.allclose(pred_labels, ref_pred, atol=1e-4, rtol=1e-4))

    print("KERNEL_OK")
</pallas_src>

<mosaic_0001>
module attributes {stable_mosaic.version = 11 : i64} {
  func.func @_coregulated_kernel(%arg0: i32, %arg1: memref<16x1xi32, #tpu.memory_space<vmem>>, %arg2: memref<16x32xbf16, #tpu.memory_space<vmem>>, %arg3: memref<32x512xbf16, #tpu.memory_space<vmem>>, %arg4: memref<1x512xf32, #tpu.memory_space<vmem>>, %arg5: memref<16x128xf32, #tpu.memory_space<vmem>>, %arg6: memref<8x128xf32, #tpu.memory_space<vmem>>) attributes {dimension_semantics = [#tpu.dimension_semantics<parallel>], iteration_bounds = array<i64: 2>, scalar_prefetch = 0 : i64, scratch_operands = 0 : i64, tpu.core_type = #tpu.core_type<tc>, window_params = [{transform_indices = @transform_0, window_bounds = array<i64: 16, 1>}, {transform_indices = @transform_1, window_bounds = array<i64: 16, 32>}, {pipeline_mode = #tpu.pipeline_mode<synchronous>, transform_indices = @transform_2, window_bounds = array<i64: 32, 512>}, {pipeline_mode = #tpu.pipeline_mode<synchronous>, transform_indices = @transform_3, window_bounds = array<i64: 1, 512>}, {transform_indices = @transform_4, window_bounds = array<i64: 16, 128>}, {transform_indices = @transform_5, window_bounds = array<i64: 8, 128>}]} {
    %c0 = arith.constant 0 : index
    %c0_0 = arith.constant 0 : index
    %0 = vector.load %arg2[%c0, %c0_0] : memref<16x32xbf16, #tpu.memory_space<vmem>>, vector<16x32xbf16>
    %c0_1 = arith.constant 0 : index
    %c0_2 = arith.constant 0 : index
    %1 = vector.load %arg3[%c0_1, %c0_2] : memref<32x512xbf16, #tpu.memory_space<vmem>>, vector<32x512xbf16>
    %cst = arith.constant dense<0.000000e+00> : vector<16x512xf32>
    %2 = tpu.matmul %0, %1, %cst {dimension_numbers = #tpu.dot_dimension_numbers<[1], [0], [0], [1], [0, 0, 1, 1], [], []>} : vector<16x32xbf16>, vector<32x512xbf16>, vector<16x512xf32> -> vector<16x512xf32>
    %c0_3 = arith.constant 0 : index
    %c0_4 = arith.constant 0 : index
    %3 = vector.load %arg4[%c0_3, %c0_4] : memref<1x512xf32, #tpu.memory_space<vmem>>, vector<1x512xf32>
    %4 = vector.broadcast %3 : vector<1x512xf32> to vector<16x512xf32>
    %5 = arith.addf %2, %4 : vector<16x512xf32>
    %c0_5 = arith.constant 0 : index
    %c0_6 = arith.constant 0 : index
    %6 = vector.load %arg1[%c0_5, %c0_6] : memref<16x1xi32, #tpu.memory_space<vmem>>, vector<16x1xi32>
    %c65535_i32 = arith.constant 65535 : i32
    %7 = vector.broadcast %c65535_i32 : i32 to vector<16x1xi32>
    %8 = arith.andi %6, %7 : vector<16x1xi32>
    %c16_i32 = arith.constant 16 : i32
    %9 = vector.broadcast %c16_i32 : i32 to vector<16x1xi32>
    %10 = arith.shrsi %6, %9 : vector<16x1xi32>
    %11 = arith.sitofp %10 : vector<16x1xi32> to vector<16x1xf32>
    %12 = tpu.iota {dimensions = array<i32: 1>} : vector<16x128xi32>
    %13 = vector.broadcast %8 : vector<16x1xi32> to vector<16x128xi32>
    %14 = arith.cmpi eq, %13, %12 : vector<16x128xi32>
    %15 = arith.extui %14 : vector<16x128xi1> to vector<16x128xi32>
    %16 = arith.sitofp %15 : vector<16x128xi32> to vector<16x128xf32>
    %c8_i32 = arith.constant 8 : i32
    %17 = vector.broadcast %c8_i32 : i32 to vector<16x128xi32>
    %18 = arith.cmpi slt, %12, %17 : vector<16x128xi32>
    %cst_7 = arith.constant 0.000000e+00 : f32
    %19 = vector.broadcast %cst_7 : f32 to vector<16x128xf32>
    %cst_8 = arith.constant 0.000000e+00 : f32
    %20 = vector.broadcast %cst_8 : f32 to vector<16x128xf32>
    %21 = vector.extract_strided_slice %5 {offsets = [0, 0], sizes = [16, 128], strides = [1, 1]} : vector<16x512xf32> to vector<16x128xf32>
    %cst_9 = arith.constant dense<0xFF800000> : vector<16xf32>
    %22 = vector.multi_reduction <maximumf>, %21, %cst_9 [1] : vector<16x128xf32> to vector<16xf32>
    %23 = vector.shape_cast %22 : vector<16xf32> to vector<16x1xf32>
    %24 = vector.broadcast %23 : vector<16x1xf32> to vector<16x128xf32>
    %25 = arith.subf %21, %24 : vector<16x128xf32>
    %26 = math.exp %25 : vector<16x128xf32>
    %cst_10 = arith.constant dense<0.000000e+00> : vector<16xf32>
    %27 = vector.multi_reduction <add>, %26, %cst_10 [1] : vector<16x128xf32> to vector<16xf32>
    %28 = vector.shape_cast %27 : vector<16xf32> to vector<16x1xf32>
    %29 = vector.broadcast %28 : vector<16x1xf32> to vector<16x128xf32>
    %30 = arith.divf %26, %29 : vector<16x128xf32>
    %31 = vector.broadcast %23 : vector<16x1xf32> to vector<16x128xf32>
    %32 = arith.subf %21, %31 : vector<16x128xf32>
    %33 = math.log %28 : vector<16x1xf32>
    %34 = vector.broadcast %33 : vector<16x1xf32> to vector<16x128xf32>
    %35 = arith.subf %32, %34 : vector<16x128xf32>
    %36 = arith.mulf %16, %35 : vector<16x128xf32>
    %37 = vector.shape_cast %36 : vector<16x128xf32> to vector<1x16x128xf32>
    %cst_11 = arith.constant dense<0.000000e+00> : vector<1xf32>
    %38 = vector.multi_reduction <add>, %37, %cst_11 [1, 2] : vector<1x16x128xf32> to vector<1xf32>
    %39 = vector.shape_cast %38 : vector<1xf32> to vector<1x1x1xf32>
    %40 = vector.extract %39[0, 0, 0] : f32 from vector<1x1x1xf32>
    %cst_12 = arith.constant 0.000000e+00 : f32
    %41 = arith.subf %cst_12, %40 : f32
    %42 = arith.addf %19, %30 : vector<16x128xf32>
    %43 = arith.addf %20, %35 : vector<16x128xf32>
    %44 = vector.extract_strided_slice %5 {offsets = [0, 128], sizes = [16, 128], strides = [1, 1]} : vector<16x512xf32> to vector<16x128xf32>
    %cst_13 = arith.constant dense<0xFF800000> : vector<16xf32>
    %45 = vector.multi_reduction <maximumf>, %44, %cst_13 [1] : vector<16x128xf32> to vector<16xf32>
    %46 = vector.shape_cast %45 : vector<16xf32> to vector<16x1xf32>
    %47 = vector.broadcast %46 : vector<16x1xf32> to vector<16x128xf32>
    %48 = arith.subf %44, %47 : vector<16x128xf32>
    %49 = math.exp %48 : vector<16x128xf32>
    %cst_14 = arith.constant dense<0.000000e+00> : vector<16xf32>
    %50 = vector.multi_reduction <add>, %49, %cst_14 [1] : vector<16x128xf32> to vector<16xf32>
    %51 = vector.shape_cast %50 : vector<16xf32> to vector<16x1xf32>
    %52 = vector.broadcast %51 : vector<16x1xf32> to vector<16x128xf32>
    %53 = arith.divf %49, %52 : vector<16x128xf32>
    %54 = vector.broadcast %46 : vector<16x1xf32> to vector<16x128xf32>
    %55 = arith.subf %44, %54 : vector<16x128xf32>
    %56 = math.log %51 : vector<16x1xf32>
    %57 = vector.broadcast %56 : vector<16x1xf32> to vector<16x128xf32>
    %58 = arith.subf %55, %57 : vector<16x128xf32>
    %59 = arith.mulf %16, %58 : vector<16x128xf32>
    %60 = vector.shape_cast %59 : vector<16x128xf32> to vector<1x16x128xf32>
    %cst_15 = arith.constant dense<0.000000e+00> : vector<1xf32>
    %61 = vector.multi_reduction <add>, %60, %cst_15 [1, 2] : vector<1x16x128xf32> to vector<1xf32>
    %62 = vector.shape_cast %61 : vector<1xf32> to vector<1x1x1xf32>
    %63 = vector.extract %62[0, 0, 0] : f32 from vector<1x1x1xf32>
    %64 = arith.subf %41, %63 : f32
    %65 = arith.addf %42, %53 : vector<16x128xf32>
    %66 = arith.addf %43, %58 : vector<16x128xf32>
    %67 = vector.extract_strided_slice %5 {offsets = [0, 256], sizes = [16, 128], strides = [1, 1]} : vector<16x512xf32> to vector<16x128xf32>
    %cst_16 = arith.constant dense<0xFF800000> : vector<16xf32>
    %68 = vector.multi_reduction <maximumf>, %67, %cst_16 [1] : vector<16x128xf32> to vector<16xf32>
    %69 = vector.shape_cast %68 : vector<16xf32> to vector<16x1xf32>
    %70 = vector.broadcast %69 : vector<16x1xf32> to vector<16x128xf32>
    %71 = arith.subf %67, %70 : vector<16x128xf32>
    %72 = math.exp %71 : vector<16x128xf32>
    %cst_17 = arith.constant dense<0.000000e+00> : vector<16xf32>
    %73 = vector.multi_reduction <add>, %72, %cst_17 [1] : vector<16x128xf32> to vector<16xf32>
    %74 = vector.shape_cast %73 : vector<16xf32> to vector<16x1xf32>
    %75 = vector.broadcast %74 : vector<16x1xf32> to vector<16x128xf32>
    %76 = arith.divf %72, %75 : vector<16x128xf32>
    %77 = vector.broadcast %69 : vector<16x1xf32> to vector<16x128xf32>
    %78 = arith.subf %67, %77 : vector<16x128xf32>
    %79 = math.log %74 : vector<16x1xf32>
    %80 = vector.broadcast %79 : vector<16x1xf32> to vector<16x128xf32>
    %81 = arith.subf %78, %80 : vector<16x128xf32>
    %82 = arith.mulf %16, %81 : vector<16x128xf32>
    %83 = vector.shape_cast %82 : vector<16x128xf32> to vector<1x16x128xf32>
    %cst_18 = arith.constant dense<0.000000e+00> : vector<1xf32>
    %84 = vector.multi_reduction <add>, %83, %cst_18 [1, 2] : vector<1x16x128xf32> to vector<1xf32>
    %85 = vector.shape_cast %84 : vector<1xf32> to vector<1x1x1xf32>
    %86 = vector.extract %85[0, 0, 0] : f32 from vector<1x1x1xf32>
    %87 = arith.subf %64, %86 : f32
    %88 = arith.addf %65, %76 : vector<16x128xf32>
    %89 = arith.addf %66, %81 : vector<16x128xf32>
    %90 = vector.extract_strided_slice %5 {offsets = [0, 384], sizes = [16, 128], strides = [1, 1]} : vector<16x512xf32> to vector<16x128xf32>
    %cst_19 = arith.constant dense<0xFF800000> : vector<16xf32>
    %91 = vector.multi_reduction <maximumf>, %90, %cst_19 [1] : vector<16x128xf32> to vector<16xf32>
    %92 = vector.shape_cast %91 : vector<16xf32> to vector<16x1xf32>
    %93 = vector.broadcast %92 : vector<16x1xf32> to vector<16x128xf32>
    %94 = arith.subf %90, %93 : vector<16x128xf32>
    %95 = math.exp %94 : vector<16x128xf32>
    %cst_20 = arith.constant dense<0.000000e+00> : vector<16xf32>
    %96 = vector.multi_reduction <add>, %95, %cst_20 [1] : vector<16x128xf32> to vector<16xf32>
    %97 = vector.shape_cast %96 : vector<16xf32> to vector<16x1xf32>
    %98 = vector.broadcast %97 : vector<16x1xf32> to vector<16x128xf32>
    %99 = arith.divf %95, %98 : vector<16x128xf32>
    %100 = vector.broadcast %92 : vector<16x1xf32> to vector<16x128xf32>
    %101 = arith.subf %90, %100 : vector<16x128xf32>
    %102 = math.log %97 : vector<16x1xf32>
    %103 = vector.broadcast %102 : vector<16x1xf32> to vector<16x128xf32>
    %104 = arith.subf %101, %103 : vector<16x128xf32>
    %105 = arith.mulf %16, %104 : vector<16x128xf32>
    %106 = vector.shape_cast %105 : vector<16x128xf32> to vector<1x16x128xf32>
    %cst_21 = arith.constant dense<0.000000e+00> : vector<1xf32>
    %107 = vector.multi_reduction <add>, %106, %cst_21 [1, 2] : vector<1x16x128xf32> to vector<1xf32>
    %108 = vector.shape_cast %107 : vector<1xf32> to vector<1x1x1xf32>
    %109 = vector.extract %108[0, 0, 0] : f32 from vector<1x1x1xf32>
    %110 = arith.subf %87, %109 : f32
    %111 = arith.addf %88, %99 : vector<16x128xf32>
    %112 = arith.addf %89, %104 : vector<16x128xf32>
    %cst_22 = arith.constant 2.500000e-01 : f32
    %113 = vector.broadcast %cst_22 : f32 to vector<16x128xf32>
    %114 = arith.mulf %111, %113 : vector<16x128xf32>
    %115 = math.log %114 : vector<16x128xf32>
    %cst_23 = arith.constant 4.000000e+00 : f32
    %116 = vector.broadcast %cst_23 : f32 to vector<16x128xf32>
    %117 = arith.mulf %116, %115 : vector<16x128xf32>
    %118 = arith.subf %117, %112 : vector<16x128xf32>
    %119 = arith.mulf %114, %118 : vector<16x128xf32>
    %cst_24 = arith.constant 0.000000e+00 : f32
    %120 = vector.broadcast %cst_24 : f32 to vector<16x128xf32>
    %121 = arith.select %18, %119, %120 : vector<16x128xi1>, vector<16x128xf32>
    %122 = vector.broadcast %11 : vector<16x1xf32> to vector<16x128xf32>
    %123 = arith.mulf %121, %122 : vector<16x128xf32>
    %124 = vector.shape_cast %123 : vector<16x128xf32> to vector<1x16x128xf32>
    %cst_25 = arith.constant dense<0.000000e+00> : vector<1xf32>
    %125 = vector.multi_reduction <add>, %124, %cst_25 [1, 2] : vector<1x16x128xf32> to vector<1xf32>
    %126 = vector.shape_cast %125 : vector<1xf32> to vector<1x1x1xf32>
    %127 = vector.extract %126[0, 0, 0] : f32 from vector<1x1x1xf32>
    %c0_26 = arith.constant 0 : index
    %c0_27 = arith.constant 0 : index
    %128 = vector.load %arg5[%c0_26, %c0_27] : memref<16x128xf32, #tpu.memory_space<vmem>>, vector<16x128xf32>
    tpu.vector_store %arg5[%c0_26, %c0_27], %30 {strides = array<i32>} : memref<16x128xf32, #tpu.memory_space<vmem>>, vector<16x128xf32>,
    %129 = tpu.iota {dimensions = array<i32: 0>} : vector<8x128xi32>
    %130 = tpu.iota {dimensions = array<i32: 1>} : vector<8x128xi32>
    %c0_i32 = arith.constant 0 : i32
    %131 = vector.broadcast %c0_i32 : i32 to vector<8x128xi32>
    %132 = arith.cmpi eq, %129, %131 : vector<8x128xi32>
    %c0_i32_28 = arith.constant 0 : i32
    %133 = vector.broadcast %c0_i32_28 : i32 to vector<8x128xi32>
    %134 = arith.cmpi eq, %130, %133 : vector<8x128xi32>
    %135 = arith.andi %132, %134 : vector<8x128xi1>
    %c0_i32_29 = arith.constant 0 : i32
    %136 = vector.broadcast %c0_i32_29 : i32 to vector<8x128xi32>
    %137 = arith.cmpi eq, %129, %136 : vector<8x128xi32>
    %c1_i32 = arith.constant 1 : i32
    %138 = vector.broadcast %c1_i32 : i32 to vector<8x128xi32>
    %139 = arith.cmpi eq, %130, %138 : vector<8x128xi32>
    %140 = arith.andi %137, %139 : vector<8x128xi1>
    %cst_30 = arith.constant 0.000000e+00 : f32
    %141 = vector.broadcast %127 : f32 to vector<8x128xf32>
    %142 = vector.broadcast %cst_30 : f32 to vector<8x128xf32>
    %143 = arith.select %140, %141, %142 : vector<8x128xi1>, vector<8x128xf32>
    %144 = vector.broadcast %110 : f32 to vector<8x128xf32>
    %145 = arith.select %135, %144, %143 : vector<8x128xi1>, vector<8x128xf32>
    %c0_31 = arith.constant 0 : index
    %c0_32 = arith.constant 0 : index
    %146 = vector.load %arg6[%c0_31, %c0_32] : memref<8x128xf32, #tpu.memory_space<vmem>>, vector<8x128xf32>
    tpu.vector_store %arg6[%c0_31, %c0_32], %145 {strides = array<i32>} : memref<8x128xf32, #tpu.memory_space<vmem>>, vector<8x128xf32>,
    return
  }
  func.func @transform_0(%arg0: i32) -> (i32, i32) {
    %c0_i32 = arith.constant 0 : i32
    %c0_i32_0 = arith.constant 0 : i32
    return %arg0, %c0_i32 : i32, i32
  }
  func.func @transform_1(%arg0: i32) -> (i32, i32) {
    %c0_i32 = arith.constant 0 : i32
    %c0_i32_0 = arith.constant 0 : i32
    return %arg0, %c0_i32 : i32, i32
  }
  func.func @transform_2(%arg0: i32) -> (i32, i32) {
    %c0_i32 = arith.constant 0 : i32
    %c0_i32_0 = arith.constant 0 : i32
    %c0_i32_1 = arith.constant 0 : i32
    return %c0_i32, %c0_i32_0 : i32, i32
  }
  func.func @transform_3(%arg0: i32) -> (i32, i32) {
    %c0_i32 = arith.constant 0 : i32
    %c0_i32_0 = arith.constant 0 : i32
    %c0_i32_1 = arith.constant 0 : i32
    return %c0_i32, %c0_i32_0 : i32, i32
  }
  func.func @transform_4(%arg0: i32) -> (i32, i32) {
    %c0_i32 = arith.constant 0 : i32
    %c0_i32_0 = arith.constant 0 : i32
    return %arg0, %c0_i32 : i32, i32
  }
  func.func @transform_5(%arg0: i32) -> (i32, i32) {
    %c0_i32 = arith.constant 0 : i32
    %c0_i32_0 = arith.constant 0 : i32
    return %arg0, %c0_i32 : i32, i32
  }
}

</mosaic_0001>

<bundles_post_ra>
// kernel: tpu_custom_call.1
= control target key start
LH: loop header
LB: loop body
LE: loop exit
PB: predicated region body
PF: predicated region fallthrough
CT: control target
= control target key end

     0   :  { %11 = vsyncpa [#allocation3], 0  ;;  %s1425_s0 = inlined_call_operand.vmem [shape: s32[32,1], index: 0, kind: input, shape index: {}]   ;;  %s1426_s1 = inlined_call_operand.vmem [shape: bf16[32,32], index: 1, kind: input, shape index: {}]   ;;  %s1427_s2 = inlined_call_operand.hbm [shape: bf16[32,512], index: 2, kind: input, shape index: {}]   ;;  %s1428_s3 = inlined_call_operand.vmem [shape: f32[1,512], index: 3, kind: input, shape index: {}]   ;;  %s1429_s4 = inlined_call_operand.hbm [shape: f32[32,128], index: 4, kind: output, shape index: {0}]   ;;  %s1430_s5 = inlined_call_operand.hbm [shape: f32[16,128], index: 5, kind: output, shape index: {1}]  }
   0x1   :  { %12 = vsyncpa [#allocation4], 0 }
   0x2   :  { %14 = vsyncpa [#allocation4 + $0x1], 0 }
   0x3   :  { %15 = vsyncpa [#allocation7], 0 }
   0x4   :  { %17 = vsyncpa [#allocation7 + $0x1], 0  ;;  %s1167_s18 = smov 0   ;;  %s1169_s19 = smov 0  }
   0x5   :  { %s1171_s20 = smov 0   ;;  %s1173_s21 = smov 0  }
   0x6 LB: > { %s1188_s22 = sadd.s32 4294967295, %s1126_s21   ;;  %s829_s23 = sadd.s32 4294967294, %s1126_s21   ;;  %s1126_s21 = sphi %s1173_s21, %s1446_s21   ;;  %s1122_s20 = sphi %s1171_s20, %s1445_s20   ;;  %s1118_s19 = sphi %s1169_s19, %s1444_s19   ;;  %s1114_s18 = sphi %s1167_s18, %s1443_s18  }
   0x7   : > { %s1192_s24 = sadd.s32 1, %s1126_s21   ;;  %s124_s25 = sadd.s32 1, %s1122_s20 }
   0x8   : > { %s121_s26 = ssub.s32 %s1126_s21, %s1192_s24  ;;  %p134_p0 = scmp.ne.s32.totalorder %s1122_s20, %s1118_s19 }
   0x9   : > { %p122_p1 = scmp.eq.s32.totalorder %s121_s26, 0  ;;  %p135_p2 = scmp.eq.s32.totalorder %s1188_s22, 1 }
   0xa   : > { %p140_p3 = scmp.ne.s32.totalorder %s1118_s19, %s1114_s18  ;;  %p141_p4 = scmp.eq.s32.totalorder %s829_s23, 1 }
   0xb   : > { %s1203_s27 = scalar_select %p122_p1, %s1122_s20, %s124_s25  }
   0xc   : > { %p1205_p5 = por %p135_p2, %p134_p0  ;;  %p1209_p6 = por %p141_p4, %p140_p3 }
   0xd   : > { %p830_p7 = scmp.ge.s32.totalorder %s1126_s21, 1  ;;  %p174_p8 = scmp.lt.s32.totalorder %s1126_s21, 3 }
   0xe   : > { %s1434_s28 = scalar_select %p1205_p5, 1, 0 }
   0xf   : > { %s1435_s29 = scalar_select %p1209_p6, 1, 0 }
  0x10   : > { %p1431_p9 = scmp.eq.s32.totalorder %s1188_s22, 0  ;;  %p1216_p10 = pnand %p830_p7, %p174_p8 }
  0x11   : > { %s1128_s6 = smov [#allocation2]   ;;  %s1000_s11 = scalar_lea.hbm %s1427_s2, 1024 }
  0x12   : > { %s1436_s30 = scalar_select %p1216_p10, 1, 0 }
  0x13   : > { %s186_s7 = sshll.u32 %s1128_s6, 4  ;;  %p880_p11 = pneg %p1216_p10  ;;  %s187_s7 = int_to_ptr.vmem [resolvable:$true] %s186_s7 }
  0x14   : > { %p1001_p13 = scmp.ne.s32.totalorder %s1427_s2, %s1000_s11  ;;  %p1007_p3 = scmp.lt.u32.totalorder %s1000_s11, %s1427_s2 }
  0x15   : > { %p1224_p12 = pnand %p1431_p9, %p880_p11 }
  0x17   : > { %p1002_p0 = pneg %p1224_p12 }
  0x19   : > { %p1003_p1 = pnand %p1002_p0, %p1001_p13 }
  0x1b   : > { %p1004_p2 = pneg %p1003_p1 }
  0x1d   : > { %p1009_p4 = pnand %p1007_p3, %p1004_p2 }
  0x1f   : > { %1012 = shalt.err (!%p1009_p4)
}
  0x20   : > { %s1013_s16 = scalar_lea.vmem %s187_s7, 1024  ;;  %p1021_p9 = scmp.lt.s32.totalorder %s187_s7, %s187_s7 }
  0x21   : > { %p1014_p7 = scmp.ne.s32.totalorder %s187_s7, %s1013_s16  ;;  %p1022_p6 = scmp.lt.s32.totalorder %s1013_s16, %s1013_s16 }
  0x23   : > { %p1016_p8 = pnand %p1014_p7, %p1002_p0  ;;  %p1023_p5 = por %p1022_p6, %p1021_p9 }
  0x25   : > { %p1017_p11 = pneg %p1016_p8 }
  0x27   : > { %p1024_p10 = pnand %p1023_p5, %p1017_p11 }
  0x29   : > { %1027 = shalt.err (!%p1024_p10)
}
  0x2a   : > { %s1129_s17 = smov 256   ;;  %s1130_s23 = smov 16  }
  0x2b   : > { %883 = dma.hbm_to_vmem [thread:$0]  (!%p1224_p12), %s1427_s2, 1024, %s187_s7, [#allocation3], %s1129_s17, %s1129_s17, %s1130_s23  }
  0x2c   : > { %p1438_p13 = scmp.ne.s32.totalorder %s1436_s30, 0 }
  0x2d   : > { %p1439_p1 = scmp.eq.s32.totalorder (!%p1438_p13), %s1188_s22, 0 }
  0x2e   : > { %223 = sbr.rel (%p1438_p13) target bundleno = 860 (0x35c), region = 36 }
  0x35   : > { %1101 = dma.done.wait (%p1439_p1), [#allocation3], 1024   ;;  %p1440_p0 = pmov %p1439_p1 }
  0x36   : > { %s837_s6 = sshll.u32 %s1188_s22, 1  ;;  %v1131_v0 = vmov 0   ;;  %v935_v1 = vld [vmem:[#allocation2 + $0x4] ss:$16 sps:$4 sm:$0xff]   ;;  %v937_v2 = vld [vmem:[#allocation2] ss:$16 sps:$4 sm:$0xff]   ;;  %v287_v10 = vlaneseq }
  0x37   : > { %1103 = vsyncadd (%p1440_p0), [#allocation3], 4294966272  ;;  %388 = vmatprep.mubr.bf16.mxu0 %v1131_v0  ;;  %p262_p5 = scmp.lt.s32.totalorder %s837_s6, 3  ;;  %431 = vmatprep.mubr.bf16.mxu1 %v1131_v0  ;;  %v938_v3 = vld [vmem:[#allocation2 + $0xc] ss:$16 sps:$4 sm:$0xff]   ;;  %vm352_vm0 = vcmask 261120  }
  0x38   : > { %933 = vset.pattern.permute.xlu0 %v1131_v0  ;;  %934 = vset.pattern.permute.xlu1 %v1131_v0  ;;  %v940_v4 = vld [vmem:[#allocation2 + $0x8] ss:$16 sps:$4 sm:$0xff]   ;;  %v941_v5 = vld [vmem:[#allocation2 + $0x24] ss:$16 sps:$4 sm:$0xff]   ;;  %v943_v6 = vld [vmem:[#allocation2 + $0x20] ss:$16 sps:$4 sm:$0xff]  }
  0x39   : > { %s1448_s6 = smov (!%p262_p5, %s837_s6), 3  ;;  %356 = vmatprep.subr.bf16.mxu0 %v935_v1  ;;  %399 = vmatprep.subr.bf16.mxu1 %v938_v3  ;;  %v944_v7 = vld [vmem:[#allocation2 + $0x2c] ss:$16 sps:$4 sm:$0xff]   ;;  %v946_v8 = vld [vmem:[#allocation2 + $0x28] ss:$16 sps:$4 sm:$0xff]   ;;  %v1258_v11 = vshrl.u32 %v287_v10, 7 }
  0x3a   : > { %s840_s30 = sshll.u32 %s1448_s6, 2  ;;  %357 = vmatpush1.bf16.msra.mxu0 %v937_v2  ;;  %400 = vmatpush1.bf16.msra.mxu1 %v940_v4  ;;  %v285_v13 = vld [vmem:[%s1428_s3] sm:$0xf]  ;;  %s838_s12 = sshll.u32 %s1448_s6, 3 }
  0x3b   : > { %s271_s9 = scalar_lea.vmem %s1426_s1, %s840_s30  ;;  %358 = vmatprep.subr.bf16.mxu0 %v941_v5  ;;  %401 = vmatprep.subr.bf16.mxu1 %v944_v7  ;;  %v289_v12 = vsub.s32 0, %v1258_v11  ;;  %v293_v14 = vsub.s32 1, %v1258_v11  ;;  %v297_v15 = vsub.s32 2, %v1258_v11  ;;  %v301_v29 = vsub.s32 3, %v1258_v11  ;;  %s265_s15 = scalar_lea.vmem %s1425_s0, %s838_s12 }
  0x3c   : > { %v947_v9 = vld [vmem:[%s271_s9] sm:$0xff]   ;;  %v443_v7 = vld [vmem:[%s265_s15 + $0x8] sm:$0xff]  ;;  %s1314_s16 = sand.u32 1, %s1118_s19   ;;  %s861_s25 = sshll.u32 %s1188_s22, 8 }
  0x3d   : > { %v290_v16 = vrot.slane %v285_v13, %v289_v12  ;;  %v294_v17 = vrot.slane %v285_v13, %v293_v14  ;;  %v298_v18 = vrot.slane %v285_v13, %v297_v15  ;;  %v302_v33 = vrot.slane %v285_v13, %v301_v29  ;;  %v442_v5 = vld [vmem:[%s265_s15] sm:$0xff]  ;;  %s835_s17 = sshll.u32 %s1314_s16, 4  ;;  %s1345_s30 = scalar_lea.hbm %s1429_s4, %s861_s25 }
  0x3e   : > { %359 = vmatpush1.bf16.msra.mxu0 %v943_v6  ;;  %402 = vmatpush1.bf16.msra.mxu1 %v946_v8  ;;  %v444_v6 = vand.u32 65535, %v442_v5  ;;  %v445_v8 = vand.u32 65535, %v443_v7  ;;  %v447_v13 = vshra.s32 %v443_v7, 16  ;;  %s1317_s23 = scalar_lea.vmem [#allocation5], %s835_s17  ;;  %s680_s8 = scalar_lea.sflag [#allocation4], %s1314_s16 }
  0x3f   : > { %s698_s7 = sshll.u32 %s1317_s23, 4  ;;  %p1441_p9 = scmp.ne.s32.totalorder %s1434_s28, 0  ;;  %s1348_s7 = int_to_ptr.vmem [resolvable:$true] %s698_s7 }
  0x40   : > { %v449_v14 = vcvt.s32.f32 %v447_v13  ;;  %s1028_s9 = scalar_lea.vmem %s1348_s7, 256  ;;  %s1133_s10 = smov [#allocation5]  }
  0x41   : > { %850 = vmatmul.mubr.msk.bf16.vlgmr.msra.gmra.mrb[0].mxu0 %vm352_vm0, %v947_v9  ;;  %851 = vmatmul.mubr.msk.bf16.vlgmr.msra.gmra.mrb[0].mxu1 %vm352_vm0, %v947_v9  ;;  %v446_v9 = vshra.s32 %v442_v5, 16  ;;  %p1029_p6 = scmp.ne.s32.totalorder %s1348_s7, %s1028_s9  ;;  %s1032_s11 = sshll.u32 %s1133_s10, 4  ;;  %s1033_s11 = int_to_ptr.vmem [resolvable:$false] %s1032_s11 }
  0x42   : > { %s1034_s12 = scalar_lea.vmem %s1033_s11, 512  ;;  %p1035_p2 = scmp.lt.s32.totalorder %s1348_s7, %s1033_s11 }
  0x43   : > { %v448_v12 = vcvt.s32.f32 %v446_v9  ;;  %p1030_p10 = pnand %p1029_p6, %p1441_p9  ;;  %p1036_p3 = scmp.lt.s32.totalorder %s1034_s12, %s1028_s9 }
  0x45   : > { %p1031_p12 = pneg %p1030_p10  ;;  %p1037_p4 = por %p1036_p3, %p1035_p2 }
  0x47   : > { %p1038_p7 = pnand %p1037_p4, %p1031_p12 }
 0x114   : > { %v390_v19 = vpop.f32.mrb[0].mxu0  ;;  %v433_v23 = vpop.f32.mrb[0].mxu1 }
 0x115   : > { %v391_v20 = vadd.f32 %v390_v19, %v290_v16  ;;  %v392_v21 = vpop.f32.mrb[1].mxu0  ;;  %v434_v25 = vadd.f32 %v433_v23, %v298_v18  ;;  %v435_v26 = vpop.f32.mrb[1].mxu1 }
 0x116   : > { %v393_v22 = vadd.f32 %v392_v21, %v294_v17  ;;  %v394_v24 = vpop.f32.mrb[2].mxu0  ;;  %v437_v28 = vpop.f32.mrb[2].mxu1  ;;  %v436_v35 = vadd.f32 %v435_v26, %v302_v33  ;;  %v1321_v26 = vand.u32 127, %v287_v10 }
 0x117   : > { %v396_v27 = vpop.f32.mrb[3].mxu0  ;;  %465 = vmax.xlane.f32.xlu0 %v391_v20  ;;  %v438_v30 = vadd.f32 %v437_v28, %v298_v18  ;;  %v439_v31 = vpop.f32.mrb[3].mxu1  ;;  %v395_v32 = vadd.f32 %v394_v24, %v290_v16 }
 0x118   : > { %506 = vmax.xlane.f32.xlu1 %v393_v22  ;;  %v397_v34 = vadd.f32 %v396_v27, %v294_v17  ;;  %v440_v36 = vadd.f32 %v439_v31, %v302_v33  ;;  %vm464_vm3 = vcmp.lt.s32.totalorder %v1321_v26, 8 }
 0x11b   : > { %547 = vmax.xlane.f32.xlu0 %v434_v25 }
 0x11c   : > { %549 = vmax.xlane.f32.xlu1 %v438_v30 }
 0x11f   : > { %467 = vmax.xlane.f32.xlu0 %v395_v32 }
 0x120   : > { %508 = vmax.xlane.f32.xlu1 %v397_v34 }
 0x123   : > { %588 = vmax.xlane.f32.xlu0 %v436_v35 }
 0x124   : > { %590 = vmax.xlane.f32.xlu1 %v440_v36 }
 0x1a4   : > { %v466_v37 = vpop.xlane.xlu0 %465 }
 0x1a5   : > { %v1267_v38 = vsub.f32 %v391_v20, %v466_v37  ;;  %v507_v39 = vpop.xlane.xlu1 %506 }
 0x1a6   : > { %v1270_v41 = vsub.f32 %v393_v22, %v507_v39 }
 0x1a7   : > { %v471_v40 = vmul.f32 1.442695, %v1267_v38 }
 0x1a8   : > { %v548_v42 = vpop.xlane.xlu0 %547  ;;  %v512_v46 = vmul.f32 1.442695, %v1270_v41 }
 0x1a9   : > { %948 = vpow2.f32 %v471_v40  ;;  %v1272_v43 = vsub.f32 %v434_v25, %v548_v42  ;;  %v550_v44 = vpop.xlane.xlu1 %549 }
 0x1aa   : > { %v1276_v47 = vsub.f32 %v438_v30, %v550_v44 }
 0x1ab   : > { %v553_v45 = vmul.f32 1.442695, %v1272_v43 }
 0x1ac   : > { %v468_v48 = vpop.xlane.xlu0 %467  ;;  %v555_v52 = vmul.f32 1.442695, %v1276_v47 }
 0x1ad   : > { %950 = vpow2.f32 %v553_v45  ;;  %v1278_v49 = vsub.f32 %v395_v32, %v468_v48  ;;  %v509_v50 = vpop.xlane.xlu1 %508  ;;  %v1132_v45 = vmov 0.0  }
 0x1ae   : > { %952 = vpow2.f32 %v512_v46  ;;  %v1282_v54 = vsub.f32 %v397_v34, %v509_v50 }
 0x1af   : > { %v473_v51 = vmul.f32 1.442695, %v1278_v49 }
 0x1b0   : > { %v589_v53 = vpop.xlane.xlu0 %588  ;;  %v514_v59 = vmul.f32 1.442695, %v1282_v54 }
 0x1b1   : > { %954 = vpow2.f32 %v473_v51  ;;  %v1284_v55 = vsub.f32 %v436_v35, %v589_v53  ;;  %v591_v56 = vpop.xlane.xlu1 %590 }
 0x1b2   : > { %956 = vpow2.f32 %v555_v52  ;;  %v1288_v60 = vsub.f32 %v440_v36, %v591_v56 }
 0x1b3   : > { %v949_v57 = vpop.eup %948  ;;  %v594_v58 = vmul.f32 1.442695, %v1284_v55 }
 0x1b4   : > { %475 = vadd.xlane.f32.xlu0 %v949_v57  ;;  %v596_v62 = vmul.f32 1.442695, %v1288_v60 }
 0x1b5   : > { %958 = vpow2.f32 %v594_v58 }
 0x1b6   : > { %960 = vpow2.f32 %v514_v59 }
 0x1b7   : > { %v1290_v61 = vpop.eup %950  ;;  %962 = vpow2.f32 %v596_v62 }
 0x1b8   : > { %557 = vadd.xlane.f32.xlu0 %v1290_v61  ;;  %v1294_v63 = vpop.eup %952 }
 0x1bb   : > { %v955_v0 = vpop.eup %954 }
 0x1bc   : > { %516 = vadd.xlane.f32.xlu0 %v1294_v63  ;;  %477 = vadd.xlane.f32.xlu1 %v955_v0  ;;  %v1297_v1 = vpop.eup %956 }
 0x1bf   : > { %v1299_v2 = vpop.eup %958 }
 0x1c0   : > { %559 = vadd.xlane.f32.xlu1 %v1297_v1  ;;  %598 = vadd.xlane.f32.xlu0 %v1299_v2  ;;  %v1303_v3 = vpop.eup %960 }
 0x1c1   : > { %v1306_v4 = vpop.eup %962 }
 0x1c4   : > { %518 = vadd.xlane.f32.xlu1 %v1303_v3 }
 0x1c8   : > { %600 = vadd.xlane.f32.xlu1 %v1306_v4 }
 0x1d6   : > { %453 = vperm.xlu0 %933, %v444_v6  }
 0x1d9   : > { %456 = vperm.xlu1 %934, %v445_v8  }
 0x1dd   : > { %645 = vperm.xlu1 %934, %v448_v12  }
 0x1e1   : > { %650 = vperm.xlu1 %934, %v449_v14  }
 0x241   : > { %v476_v15 = vpop.xlane.xlu0 %475 }
 0x242   : > { %964 = vrcp.f32 %v476_v15 }
 0x243   : > { %966 = vlog2.f32 %v476_v15 }
 0x245   : > { %v558_v16 = vpop.xlane.xlu0 %557 }
 0x246   : > { %968 = vrcp.f32 %v558_v16 }
 0x247   : > { %970 = vlog2.f32 %v558_v16 }
 0x249   : > { %v478_v17 = vpop.xlane.xlu1 %477  ;;  %v517_v18 = vpop.xlane.xlu0 %516 }
 0x24a   : > { %972 = vrcp.f32 %v478_v17 }
 0x24b   : > { %974 = vlog2.f32 %v478_v17 }
 0x24c   : > { %v965_v19 = vpop.eup %964  ;;  %976 = vrcp.f32 %v517_v18 }
 0x24d   : > { %978 = vlog2.f32 %v517_v18  ;;  %v560_v20 = vpop.xlane.xlu1 %559  ;;  %v599_v21 = vpop.xlane.xlu0 %598  ;;  %v480_v22 = vmul.f32 %v965_v19, %v949_v57 }
 0x24e   : > { %980 = vrcp.f32 %v560_v20  ;;  %v967_v23 = vpop.eup %966 }
 0x24f   : > { %982 = vlog2.f32 %v560_v20  ;;  %665 = vst [vmem:[%s1317_s23] sm:$0xff] %v480_v22  ;;  %v484_v34 = vmul.f32 0.6931472, %v967_v23 }
 0x250   : > { %984 = vrcp.f32 %v599_v21  ;;  %v969_v25 = vpop.eup %968 }
 0x251   : > { %986 = vlog2.f32 %v599_v21  ;;  %v519_v24 = vpop.xlane.xlu1 %518  ;;  %v971_v27 = vpop.eup %970  ;;  %v562_v39 = vmul.f32 %v969_v25, %v1290_v61  ;;  %v487_v53 = vsub.f32 %v1267_v38, %v484_v34 }
 0x252   : > { %988 = vrcp.f32 %v519_v24  ;;  %v566_v42 = vmul.f32 0.6931472, %v971_v27 }
 0x253   : > { %990 = vlog2.f32 %v519_v24 }
 0x254   : > { %v973_v28 = vpop.eup %972  ;;  %v569_v7 = vsub.f32 %v1272_v43, %v566_v42 }
 0x255   : > { %v975_v29 = vpop.eup %974  ;;  %v601_v30 = vpop.xlane.xlu1 %600  ;;  %v482_v32 = vmul.f32 %v973_v28, %v955_v0 }
 0x256   : > { %v454_v31 = vpop.permute.xlu0 %453  ;;  %v977_v33 = vpop.eup %976  ;;  %v486_v35 = vmul.f32 0.6931472, %v975_v29  ;;  %992 = vrcp.f32 %v601_v30 }
 0x257   : > { %vm458_vm1 = vcmp.eq.s32.totalorder %v454_v31, %v1321_v26  ;;  %v979_v36 = vpop.eup %978  ;;  %994 = vlog2.f32 %v601_v30  ;;  %v521_v37 = vmul.f32 %v977_v33, %v1294_v63  ;;  %666 = vst [vmem:[%s1317_s23 + $0x8] sm:$0xff] %v482_v32 }
 0x258   : > { %v981_v10 = vpop.eup %980  ;;  %v525_v44 = vmul.f32 0.6931472, %v979_v36  ;;  %v852_v46 = vsel %vm458_vm1, 1.0, %v1132_v45  ;;  %v488_v56 = vsub.f32 %v1278_v49, %v486_v35 }
 0x259   : > { %v983_v40 = vpop.eup %982  ;;  %v457_v48 = vpop.permute.xlu1 %456  ;;  %v543_v50 = vadd.f32 %v521_v37, %v480_v22  ;;  %v489_v63 = vmul.f32 %v852_v46, %v487_v53  ;;  %v571_v18 = vmul.f32 %v852_v46, %v569_v7 }
 0x25a   : > { %v985_v51 = vpop.eup %984  ;;  %v568_v52 = vmul.f32 0.6931472, %v983_v40  ;;  %vm459_vm2 = vcmp.eq.s32.totalorder %v457_v48, %v1321_v26  ;;  %v528_v8 = vsub.f32 %v1270_v41, %v525_v44 }
 0x25b   : > { %v987_v57 = vpop.eup %986  ;;  %v853_v58 = vsel %vm459_vm2, 1.0, %v1132_v45  ;;  %v584_v59 = vadd.f32 %v562_v39, %v543_v50  ;;  %v603_v61 = vmul.f32 %v985_v51, %v1299_v2  ;;  %v564_v2 = vmul.f32 %v981_v10, %v1297_v1 }
 0x25c   : > { %v989_v62 = vpop.eup %988  ;;  %v490_v0 = vmul.f32 %v853_v58, %v488_v56  ;;  %v570_v5 = vsub.f32 %v1276_v47, %v568_v52  ;;  %v607_v12 = vmul.f32 0.6931472, %v987_v57  ;;  %v530_v43 = vmul.f32 %v852_v46, %v528_v8 }
 0x25d   : > { %v991_v6 = vpop.eup %990  ;;  %v625_v9 = vadd.f32 %v603_v61, %v584_v59  ;;  %v523_v38 = vmul.f32 %v989_v62, %v1303_v3  ;;  %v545_v28 = vadd.f32 %v528_v8, %v487_v53 }
 0x25e   : > { %v527_v49 = vmul.f32 0.6931472, %v991_v6  ;;  %v491_v13 = vadd.f32 %v490_v0, %v489_v63  ;;  %v572_v14 = vmul.f32 %v853_v58, %v570_v5  ;;  %v610_v3 = vsub.f32 %v1284_v55, %v607_v12 }
 0x25f   : > { %v629_v15 = vmul.f32 0.25, %v625_v9  ;;  %v544_v16 = vadd.f32 %v523_v38, %v482_v32  ;;  %v586_v31 = vadd.f32 %v569_v7, %v545_v28 }
 0x260   : > { %v993_v17 = vpop.eup %992  ;;  %492 = vadd.xlane.f32.xlu1 %v491_v13  ;;  %v529_v47 = vsub.f32 %v1282_v54, %v527_v49  ;;  %v573_v22 = vadd.f32 %v572_v14, %v571_v18  ;;  %v612_v54 = vmul.f32 %v852_v46, %v610_v3 }
 0x261   : > { %v995_v19 = vpop.eup %994  ;;  %996 = vlog2.f32 %v629_v15  ;;  %v585_v41 = vadd.f32 %v564_v2, %v544_v16  ;;  %v605_v20 = vmul.f32 %v993_v17, %v1306_v4  ;;  %v627_v33 = vadd.f32 %v610_v3, %v586_v31 }
 0x262   : > { %v609_v21 = vmul.f32 0.6931472, %v995_v19  ;;  %v531_v23 = vmul.f32 %v853_v58, %v529_v47  ;;  %v546_v32 = vadd.f32 %v529_v47, %v488_v56 }
 0x263   : > { %v626_v24 = vadd.f32 %v605_v20, %v585_v41 }
 0x264   : > { %574 = vadd.xlane.f32.xlu1 %v573_v22  ;;  %v532_v25 = vadd.f32 %v531_v23, %v530_v43  ;;  %v611_v1 = vsub.f32 %v1288_v60, %v609_v21  ;;  %v587_v36 = vadd.f32 %v570_v5, %v546_v32  ;;  %v646_v60 = vpop.permute.xlu1 %645 }
 0x265   : > { %v630_v27 = vmul.f32 0.25, %v626_v24 }
 0x266   : > { %533 = vadd.xlane.f32.xlu0 %v532_v25  ;;  %v613_v29 = vmul.f32 %v853_v58, %v611_v1  ;;  %v628_v40 = vadd.f32 %v611_v1, %v587_v36 }
 0x267   : > { %998 = vlog2.f32 %v630_v27 }
 0x268   : > { %v614_v30 = vadd.f32 %v613_v29, %v612_v54  ;;  %v651_v50 = vpop.permute.xlu1 %650 }
 0x26a   : > { %615 = vadd.xlane.f32.xlu1 %v614_v30 }
 0x26b   : > { %v997_v4 = vpop.eup %996 }
 0x26c   : > { %v632_v55 = vmul.f32 0.6931472, %v997_v4 }
 0x26e   : > { %v635_v34 = vmul.f32 4.0, %v632_v55 }
 0x270   : > { %v637_v35 = vsub.f32 %v635_v34, %v627_v33 }
 0x271   : > { %v999_v37 = vpop.eup %998 }
 0x272   : > { %v634_v10 = vmul.f32 0.6931472, %v999_v37  ;;  %v639_v39 = vmul.f32 %v637_v35, %v629_v15 }
 0x274   : > { %v636_v42 = vmul.f32 4.0, %v634_v10  ;;  %v641_v45 = vsel %vm464_vm3, %v639_v39, 0.0 }
 0x275   : > { %v653_v51 = vmul.f32 %v646_v60, %v641_v45 }
 0x276   : > { %v638_v44 = vsub.f32 %v636_v42, %v628_v40 }
 0x278   : > { %v640_v46 = vmul.f32 %v638_v44, %v630_v27 }
 0x27a   : > { %v642_v48 = vsel %vm464_vm3, %v640_v46, 0.0 }
 0x27b   : > { %v654_v52 = vmul.f32 %v651_v50, %v642_v48 }
 0x27d   : > { %v655_v53 = vadd.f32 %v654_v52, %v653_v51 }
 0x27f   : > { %656 = vadd.xlane.f32.xlu1 %v655_v53 }
 0x280   : > { %1041 = shalt.err (!%p1038_p7)
}
 0x281   : > { %s1042_s13 = scalar_lea.hbm %s1345_s30, 256  ;;  %s1046_s17 = scalar_lea.hbm %s1429_s4, 512 }
 0x282   : > { %p1043_p8 = scmp.ne.s32.totalorder %s1345_s30, %s1042_s13  ;;  %p1047_p1 = scmp.lt.u32.totalorder %s1345_s30, %s1429_s4 }
 0x283   : > { %p1048_p0 = scmp.lt.u32.totalorder %s1046_s17, %s1042_s13  ;;  %p1050_p6 = scmp.lt.u32.totalorder %s1042_s13, %s1345_s30 }
 0x284   : > { %p1044_p11 = pnand %p1043_p8, %p1441_p9 }
 0x285   : > { %p1049_p5 = por %p1048_p0, %p1047_p1 }
 0x286   : > { %p1045_p13 = pneg %p1044_p11 }
 0x287   : > { %p1051_p10 = por %p1050_p6, %p1049_p5 }
 0x289   : > { %p1052_p12 = pnand %p1051_p10, %p1045_p13 }
 0x28b   : > { %1055 = shalt.err (!%p1052_p12)
}
 0x28c   : > { %s1134_s26 = smov 128   ;;  %s1135_s6 = smov 8   ;;  %vm669_vm4 = vcmp.eq.s32.totalorder %v1258_v11, 0  ;;  %vm672_vm5 = vcmp.eq.s32.totalorder %v1321_v26, 1  ;;  %vm670_vm6 = vcmp.eq.s32.totalorder %v1321_v26, 0 }
 0x28d   : > { %876 = dma.vmem_to_hbm [thread:$0]  (%p1441_p9), %s1348_s7, 256, %s1345_s30, %s680_s8, %s1134_s26, %s1134_s26, %s1135_s6   ;;  %vm673_vm7 = vmand %vm669_vm4, %vm672_vm5 }
 0x28e   : > { %s836_s11 = sshll.u32 %s1314_s16, 3  ;;  %s858_s15 = sshll.u32 %s1188_s22, 7  ;;  %vm671_vm8 = vmand %vm669_vm4, %vm670_vm6 }
 0x28f   : > { %s260_s17 = scalar_lea.vmem [#allocation6], %s836_s11  ;;  %s685_s22 = scalar_lea.sflag [#allocation7], %s1314_s16 }
 0x290   : > { %s714_s23 = sshll.u32 %s260_s17, 4  ;;  %s1384_s23 = int_to_ptr.vmem [resolvable:$true] %s714_s23 }
 0x2ed   : > { %v493_v56 = vpop.xlane.xlu1 %492 }
 0x2ee   : > { %v494_v57 = vrot.slane %v493_v56, 4 }
 0x2f0   : > { %v495_v58 = vadd.f32 %v494_v57, %v493_v56 }
 0x2f1   : > { %v575_v59 = vpop.xlane.xlu1 %574 }
 0x2f2   : > { %v496_v61 = vrot.slane %v495_v58, 2  ;;  %v576_v62 = vrot.slane %v575_v59, 4 }
 0x2f3   : > { %v534_v63 = vpop.xlane.xlu0 %533 }
 0x2f4   : > { %v577_v0 = vadd.f32 %v576_v62, %v575_v59  ;;  %v535_v5 = vrot.slane %v534_v63, 4  ;;  %v497_v6 = vadd.f32 %v496_v61, %v495_v58 }
 0x2f6   : > { %v578_v7 = vrot.slane %v577_v0, 2  ;;  %v536_v8 = vadd.f32 %v535_v5, %v534_v63  ;;  %v498_v9 = vrot.slane %v497_v6, 1 }
 0x2f7   : > { %v616_v38 = vpop.xlane.xlu1 %615 }
 0x2f8   : > { %v537_v12 = vrot.slane %v536_v8, 2  ;;  %v617_v49 = vrot.slane %v616_v38, 4  ;;  %v499_v13 = vadd.f32 %v498_v9, %v497_v6  ;;  %v579_v14 = vadd.f32 %v578_v7, %v577_v0 }
 0x2fa   : > { %v538_v15 = vadd.f32 %v537_v12, %v536_v8  ;;  %v618_v16 = vadd.f32 %v617_v49, %v616_v38  ;;  %862 = vpush %v499_v13  ;;  %v580_v2 = vrot.slane %v579_v14, 1 }
 0x2fc   : > { %v619_v17 = vrot.slane %v618_v16, 2  ;;  %v539_v18 = vrot.slane %v538_v15, 1  ;;  %v581_v47 = vadd.f32 %v580_v2, %v579_v14 }
 0x2fe   : > { %v540_v19 = vadd.f32 %v539_v18, %v538_v15  ;;  %v620_v43 = vadd.f32 %v619_v17, %v618_v16 }
 0x300   : > { %864 = vpush %v540_v19  ;;  %v621_v41 = vrot.slane %v620_v43, 1 }
 0x301   : > { %866 = vpush %v581_v47 }
 0x302   : > { %v622_v20 = vadd.f32 %v621_v41, %v620_v43 }
 0x304   : > { %868 = vpush %v622_v20 }
 0x30c   : > { %v657_v3 = vpop.xlane.xlu1 %656 }
 0x30d   : > { %v658_v21 = vrot.slane %v657_v3, 4 }
 0x30f   : > { %v659_v22 = vadd.f32 %v658_v21, %v657_v3 }
 0x311   : > { %v660_v23 = vrot.slane %v659_v22, 2 }
 0x313   : > { %v661_v24 = vadd.f32 %v660_v23, %v659_v22 }
 0x315   : > { %v662_v25 = vrot.slane %v661_v24, 1 }
 0x317   : > { %v663_v1 = vadd.f32 %v662_v25, %v661_v24 }
 0x319   : > { %870 = vpush %v663_v1 }
 0x32b   : > { %s863_s30 = spop %862 }
 0x32c   : > { %s501_s8 = ssub.f32 0.0, %s863_s30  ;;  %s1382_s30 = scalar_lea.hbm %s1430_s5, %s858_s15 }
 0x331   : > { %s865_s7 = spop %864 }
 0x332   : > { %s542_s9 = ssub.f32 %s501_s8, %s865_s7  ;;  %s867_s10 = spop %866 }
 0x333   : > { %s1056_s7 = scalar_lea.vmem %s1384_s23, 128  ;;  %s1136_s8 = smov [#allocation6]  }
 0x334   : > { %s583_s12 = ssub.f32 %s542_s9, %s867_s10  ;;  %p1057_p2 = scmp.ne.s32.totalorder %s1384_s23, %s1056_s7 }
 0x335   : > { %s869_s13 = spop %868  ;;  %s1060_s9 = sshll.u32 %s1136_s8, 4  ;;  %s1061_s9 = int_to_ptr.vmem [resolvable:$false] %s1060_s9 }
 0x336   : > { %s624_s14 = ssub.f32 %s583_s12, %s869_s13  ;;  %p1058_p3 = pnand %p1057_p2, %p1441_p9 }
 0x337   : > { %s1062_s10 = scalar_lea.vmem %s1061_s9, 256  ;;  %p1063_p7 = scmp.lt.s32.totalorder %s1384_s23, %s1061_s9 }
 0x338   : > { %v676_v28 = vstv %s624_s14  ;;  %p1059_p4 = pneg %p1058_p3  ;;  %p1064_p8 = scmp.lt.s32.totalorder %s1062_s10, %s1056_s7 }
 0x33a   : > { %p1065_p11 = por %p1064_p8, %p1063_p7 }
 0x33c   : > { %p1066_p13 = pnand %p1065_p11, %p1059_p4 }
 0x34a   : > { %s871_s25 = spop %870 }
 0x34b   : > { %v674_v27 = vstv %s871_s25 }
 0x34c   : > { %v675_v54 = vsel %vm673_vm7, %v674_v27, 0.0 }
 0x34d   : > { %v677_v11 = vsel %vm671_vm8, %v676_v28, %v675_v54 }
 0x34e   : > { %678 = vst [vmem:[%s260_s17] sm:$0xff] %v677_v11 }
 0x34f   : > { %1069 = shalt.err (!%p1066_p13)
}
 0x350   : > { %s1070_s16 = scalar_lea.hbm %s1382_s30, 128  ;;  %s1074_s13 = scalar_lea.hbm %s1430_s5, 256 }
 0x351   : > { %p1071_p1 = scmp.ne.s32.totalorder %s1382_s30, %s1070_s16  ;;  %p1075_p6 = scmp.lt.u32.totalorder %s1382_s30, %s1430_s5 }
 0x352   : > { %p1076_p10 = scmp.lt.u32.totalorder %s1074_s13, %s1070_s16  ;;  %p1078_p2 = scmp.lt.u32.totalorder %s1070_s16, %s1382_s30 }
 0x353   : > { %p1072_p0 = pnand %p1071_p1, %p1441_p9 }
 0x354   : > { %p1077_p12 = por %p1076_p10, %p1075_p6 }
 0x355   : > { %p1073_p5 = pneg %p1072_p0 }
 0x356   : > { %p1079_p3 = por %p1078_p2, %p1077_p12 }
 0x358   : > { %p1080_p4 = pnand %p1079_p3, %p1073_p5 }
 0x35a   : > { %1083 = shalt.err (!%p1080_p4)
}
 0x35b   : > { %877 = dma.vmem_to_hbm [thread:$0]  (%p1441_p9), %s1384_s23, 128, %s1382_s30, %s685_s22  }
 0x35c PF: > { %p893_p7 = scmp.ge.s32.totalorder %s1126_s21, 2  ;;  %s726_s17 = sand.u32 1, %s1114_s18  }
 0x35d   : > { %p1442_p8 = scmp.ne.s32.totalorder %s1435_s29, 0  ;;  %s727_s25 = scalar_lea.sflag [#allocation4], %s726_s17 }
 0x35f   : > { %p885_p11 = pnand %p893_p7, %p1442_p8 }
 0x361   : > { %1105 = dma.done.wait (!%p885_p11), %s727_s25, 256  }
 0x362   : > { %1107 = vsyncadd (!%p885_p11), %s727_s25, 4294967040  ;;  %s736_s26 = scalar_lea.sflag [#allocation7], %s726_s17 }
 0x363   : > { %1109 = dma.done.wait (!%p885_p11), %s736_s26, 128  }
 0x364   : > { %1111 = vsyncadd (!%p885_p11), %s736_s26, 4294967168  ;;  %p20_p9 = scmp.ge.s32.totalorder %s1192_s24, 4   ;;  %s1443_s18 = smov %s1118_s19 }
 0x365   : > { %s1444_s19 = smov %s1122_s20  ;;  %s1445_s20 = smov %s1203_s27 }
 0x366   : > { %s1446_s21 = smov %s1192_s24  ;;  %22 = sbr.rel (!%p20_p9) target bundleno = 6 (0x6), region = 96 }
 0x36d   :  { %741 = vsyncpa [#allocation3], 1 }
 0x36e   :  { %743 = vsyncpa [#allocation3 + $0x1], 1 }
 0x36f   :  { %744 = vsyncpa [#allocation4], 1 }
 0x370   :  { %746 = vsyncpa [#allocation4 + $0x1], 1 }
 0x371   :  { %747 = vsyncpa [#allocation7], 1 }
 0x372   :  { %749 = vsyncpa [#allocation7 + $0x1], 1 }

</bundles_post_ra>
